<compile_context>
chip_gen: v7x
topology: tpu7x:2x2x1
jax: 0.10.0
libtpu: 0.0.40
codegen_flags: <defaults>
</compile_context>

<pallas_src>
import functools

import jax
import jax.numpy as jnp
from jax.experimental import pallas as pl
from jax.experimental.pallas import tpu as pltpu


def _affine_coupling_kernel(x_ref, w1_ref, b1_ref, w2s_ref, b2s_ref,
                            w2t_ref, b2t_ref, out_ref, *,
                            d2, write_passthrough, matmul_dtype):
    x1 = x_ref[:, :d2]
    x2 = x_ref[:, d2:].astype(jnp.float32)

    # Hidden layer: relu(x1 @ W1 + b1)   (MXU matmul, f32 accumulate)
    x1_mm = x1 if matmul_dtype is None else x1.astype(matmul_dtype)
    h = jnp.dot(x1_mm, w1_ref[...], preferred_element_type=jnp.float32)
    h = jnp.maximum(h + b1_ref[...].astype(jnp.float32), 0.0)
    h_mm = h if matmul_dtype is None else h.astype(matmul_dtype)

    # Output layer split into lane-dense halves: s = h @ W2s + b2s,
    # t = h @ W2t + b2t (no post-matmul slicing at a non-aligned offset).
    s = jnp.dot(h_mm, w2s_ref[...], preferred_element_type=jnp.float32)
    s = s + b2s_ref[...].astype(jnp.float32)
    t = jnp.dot(h_mm, w2t_ref[...], preferred_element_type=jnp.float32)
    t = t + b2t_ref[...].astype(jnp.float32)

    # Affine transform in f32 (exp on the EUP), cast once at the store.
    y2 = (x2 * jnp.exp(s) + t).astype(out_ref.dtype)

    if write_passthrough:
        # Full-width output row block (default path): two lane-dense stores.
        out_ref[:, :d2] = x1.astype(out_ref.dtype)
        out_ref[:, d2:] = y2
    else:
        # Aliased path: only the transformed half is written (lane-dense block);
        # the x1 half survives via input_output_aliases.
        out_ref[...] = y2


def _pick_batch_tile(B):
    # Prefer tiles that give >= 4 pipeline steps (real double-buffering and
    # work for both v7x TensorCores); cap at 512 rows so the double-buffered
    # x/out blocks stay far inside the scoped VMEM limit on every chip.
    for cand in (512, 256, 128, 64, 32, 16, 8):
        if cand <= B and B % cand == 0 and B // cand >= 4:
            return cand
    for cand in (512, 256, 128, 64, 32, 16, 8):
        if cand <= B and B % cand == 0:
            return cand
    return B


def affine_coupling(x, w1, b1, w2, b2, *, batch_tile=None, matmul_dtype=None,
                    alias_input=False):
    """Forward pass of AffineCoupling.

    x : [B, D]            (D must be even)
    w1: [D//2, H], b1: [H]
    w2: [H, D],    b2: [D]      (weights transposed vs. torch's [out, in])
    matmul_dtype: optionally jnp.bfloat16 to feed the MXU bf16 operands
                  (v6e/v7x fast path); exp/affine math stays f32.
    alias_input : write only the transformed half and alias the output onto x.
                  Only profitable when the caller donates x (jit+donate);
                  requires D//2 % 128 == 0.
    """
    B, D = x.shape
    assert D % 2 == 0, "AffineCoupling requires an even input_dim"
    D2 = D // 2
    H = w1.shape[1]
    assert w1.shape == (D2, H) and w2.shape == (H, D)
    assert b1.shape == (H,) and b2.shape == (D,)

    b1 = b1.reshape(1, H)
    b2 = b2.reshape(1, D)

    # One-time wrapper-side split of the second linear into s-/t- halves:
    # keeps every in-kernel matmul output lane-dense (no slicing of y at D2).
    w2s, w2t = w2[:, :D2], w2[:, D2:]
    b2s, b2t = b2[:, :D2], b2[:, D2:]

    if matmul_dtype is not None:
        w1 = w1.astype(matmul_dtype)
        w2s = w2s.astype(matmul_dtype)
        w2t = w2t.astype(matmul_dtype)

    if batch_tile is None:
        batch_tile = _pick_batch_tile(B)
    assert B % batch_tile == 0
    grid = (B // batch_tile,)

    use_alias = bool(alias_input) and (D2 % 128 == 0)
    if use_alias:
        # Half-width lane-dense output block aliased onto x; the passthrough
        # half is never re-written to HBM.
        out_specs = pl.BlockSpec((batch_tile, D2), lambda i: (i, 1))
        io_aliases = {0: 0}
    else:
        # Default: full-width lane-dense row block (no hidden defensive copy).
        out_specs = pl.BlockSpec((batch_tile, D), lambda i: (i, 0))
        io_aliases = {}

    kernel = functools.partial(
        _affine_coupling_kernel,
        d2=D2,
        write_passthrough=not use_alias,
        matmul_dtype=matmul_dtype,
    )

    itemsize = int(x.dtype.itemsize)
    w_bytes = sum(int(a.size) * int(a.dtype.itemsize)
                  for a in (w1, w2s, w2t, b1, b2s, b2t))
    out_bytes = B * (D2 if use_alias else D) * itemsize
    cost = pl.CostEstimate(
        flops=int(2 * B * H * (D2 + D)),
        transcendentals=int(B * D2),
        bytes_accessed=int(B * D * itemsize + w_bytes + out_bytes),
    )

    return pl.pallas_call(
        kernel,
        out_shape=jax.ShapeDtypeStruct((B, D), x.dtype),
        grid_spec=pltpu.PrefetchScalarGridSpec(
            num_scalar_prefetch=0,
            grid=grid,
            in_specs=[
                pl.BlockSpec((batch_tile, D), lambda i: (i, 0)),  # x   (streamed)
                pl.BlockSpec((D2, H), lambda i: (0, 0)),          # W1  (resident)
                pl.BlockSpec((1, H), lambda i: (0, 0)),           # b1
                pl.BlockSpec((H, D2), lambda i: (0, 0)),          # W2s
                pl.BlockSpec((1, D2), lambda i: (0, 0)),          # b2s
                pl.BlockSpec((H, D2), lambda i: (0, 0)),          # W2t
                pl.BlockSpec((1, D2), lambda i: (0, 0)),          # b2t
            ],
            out_specs=out_specs,
        ),
        input_output_aliases=io_aliases,
        compiler_params=pltpu.CompilerParams(
            dimension_semantics=("parallel",),
        ),
        cost_estimate=cost,
    )(x, w1, b1, w2s, b2s, w2t, b2t)


def reference(x, w1, b1, w2, b2):
    D2 = x.shape[1] // 2
    x1, x2 = x[:, :D2], x[:, D2:]
    h = jnp.maximum(x1 @ w1 + b1, 0.0)
    y = h @ w2 + b2
    s, t = y[:, :D2], y[:, D2:]
    return jnp.concatenate([x1, x2 * jnp.exp(s) + t], axis=1)


if __name__ == "__main__":
    key = jax.random.PRNGKey(0)

    def make_params(kp, D, H):
        D2 = D // 2
        k1, k2, k3, k4 = jax.random.split(kp, 4)
        bound1 = 1.0 / float(D2) ** 0.5
        bound2 = 1.0 / float(H) ** 0.5
        w1 = jax.random.uniform(k1, (D2, H), jnp.float32, -bound1, bound1)
        b1 = jax.random.uniform(k2, (H,), jnp.float32, -bound1, bound1)
        w2 = jax.random.uniform(k3, (H, D), jnp.float32, -bound2, bound2)
        b2 = jax.random.uniform(k4, (D,), jnp.float32, -bound2, bound2)
        return w1, b1, w2, b2

    # Case 1: tiny module-like shapes (correctness smoke test; D2 is not
    # lane-aligned, exercises the full-width-output path with masked stores).
    B, D, H = 64, 8, 32
    key, kx, kp = jax.random.split(key, 3)
    x = jax.random.normal(kx, (B, D), jnp.float32)
    w1, b1, w2, b2 = make_params(kp, D, H)
    ref = reference(x, w1, b1, w2, b2)
    out = jax.block_until_ready(affine_coupling(x, w1, b1, w2, b2))
    assert out.shape == (B, D)
    assert jnp.allclose(out, ref, atol=2e-2, rtol=2e-2), "tiny case mismatch"

    # Case 2: lane-aligned shapes (D2 % 128 == 0), default full-width path.
    B, D, H = 256, 256, 256
    key, kx, kp = jax.random.split(key, 3)
    x = jax.random.normal(kx, (B, D), jnp.float32)
    w1, b1, w2, b2 = make_params(kp, D, H)
    ref = reference(x, w1, b1, w2, b2)
    out = jax.block_until_ready(affine_coupling(x, w1, b1, w2, b2))
    assert out.shape == (B, D)
    assert jnp.allclose(out, ref, atol=2e-2, rtol=2e-2), "aligned case mismatch"

    # Case 3: aliased half-width-output path under jit + donated input buffer
    # (the regime where skipping the passthrough writeback actually wins).
    aliased_fn = jax.jit(
        functools.partial(affine_coupling, alias_input=True),
        donate_argnums=(0,))
    x_don = x + 0.0  # fresh buffer to donate; `x` stays valid for the check
    out_alias = jax.block_until_ready(aliased_fn(x_don, w1, b1, w2, b2))
    assert out_alias.shape == (B, D)
    assert jnp.allclose(out_alias, ref, atol=2e-2, rtol=2e-2), "alias case mismatch"

    # Case 4: bf16 MXU operands (v6e/v7x fast path), f32 epilogue.
    out_bf16 = jax.block_until_ready(
        affine_coupling(x, w1, b1, w2, b2, matmul_dtype=jnp.bfloat16))
    assert jnp.allclose(out_bf16, ref, atol=6e-2, rtol=6e-2), "bf16 case mismatch"

    print("KERNEL_OK")
</pallas_src>

<mosaic_0001>
module attributes {stable_mosaic.version = 11 : i64} {
  func.func @_affine_coupling_kernel(%arg0: i32, %arg1: memref<16x8xf32, #tpu.memory_space<vmem>>, %arg2: memref<4x32xf32, #tpu.memory_space<vmem>>, %arg3: memref<1x32xf32, #tpu.memory_space<vmem>>, %arg4: memref<32x4xf32, #tpu.memory_space<vmem>>, %arg5: memref<1x4xf32, #tpu.memory_space<vmem>>, %arg6: memref<32x4xf32, #tpu.memory_space<vmem>>, %arg7: memref<1x4xf32, #tpu.memory_space<vmem>>, %arg8: memref<16x8xf32, #tpu.memory_space<vmem>>) attributes {dimension_semantics = [#tpu.dimension_semantics<parallel>], iteration_bounds = array<i64: 4>, scalar_prefetch = 0 : i64, scratch_operands = 0 : i64, tpu.core_type = #tpu.core_type<tc>, window_params = [{transform_indices = @transform_0, window_bounds = array<i64: 16, 8>}, {pipeline_mode = #tpu.pipeline_mode<synchronous>, transform_indices = @transform_1, window_bounds = array<i64: 4, 32>}, {pipeline_mode = #tpu.pipeline_mode<synchronous>, transform_indices = @transform_2, window_bounds = array<i64: 1, 32>}, {pipeline_mode = #tpu.pipeline_mode<synchronous>, transform_indices = @transform_3, window_bounds = array<i64: 32, 4>}, {pipeline_mode = #tpu.pipeline_mode<synchronous>, transform_indices = @transform_4, window_bounds = array<i64: 1, 4>}, {pipeline_mode = #tpu.pipeline_mode<synchronous>, transform_indices = @transform_5, window_bounds = array<i64: 32, 4>}, {pipeline_mode = #tpu.pipeline_mode<synchronous>, transform_indices = @transform_6, window_bounds = array<i64: 1, 4>}, {transform_indices = @transform_7, window_bounds = array<i64: 16, 8>}]} {
    %c0 = arith.constant 0 : index
    %c0_0 = arith.constant 0 : index
    %0 = vector.load %arg1[%c0, %c0_0] : memref<16x8xf32, #tpu.memory_space<vmem>>, vector<16x4xf32>
    %c0_1 = arith.constant 0 : index
    %c4 = arith.constant 4 : index
    %1 = vector.load %arg1[%c0_1, %c4] : memref<16x8xf32, #tpu.memory_space<vmem>>, vector<16x4xf32>
    %c0_2 = arith.constant 0 : index
    %c0_3 = arith.constant 0 : index
    %2 = vector.load %arg2[%c0_2, %c0_3] : memref<4x32xf32, #tpu.memory_space<vmem>>, vector<4x32xf32>
    %cst = arith.constant dense<0.000000e+00> : vector<16x32xf32>
    %3 = tpu.matmul %0, %2, %cst {dimension_numbers = #tpu.dot_dimension_numbers<[1], [0], [0], [1], [0, 0, 1, 1], [], []>} : vector<16x4xf32>, vector<4x32xf32>, vector<16x32xf32> -> vector<16x32xf32>
    %c0_4 = arith.constant 0 : index
    %c0_5 = arith.constant 0 : index
    %4 = vector.load %arg3[%c0_4, %c0_5] : memref<1x32xf32, #tpu.memory_space<vmem>>, vector<1x32xf32>
    %5 = vector.broadcast %4 : vector<1x32xf32> to vector<16x32xf32>
    %6 = arith.addf %3, %5 : vector<16x32xf32>
    %cst_6 = arith.constant 0.000000e+00 : f32
    %7 = vector.broadcast %cst_6 : f32 to vector<16x32xf32>
    %8 = arith.maximumf %6, %7 : vector<16x32xf32>
    %c0_7 = arith.constant 0 : index
    %c0_8 = arith.constant 0 : index
    %9 = vector.load %arg4[%c0_7, %c0_8] : memref<32x4xf32, #tpu.memory_space<vmem>>, vector<32x4xf32>
    %cst_9 = arith.constant dense<0.000000e+00> : vector<16x4xf32>
    %10 = tpu.matmul %8, %9, %cst_9 {dimension_numbers = #tpu.dot_dimension_numbers<[1], [0], [0], [1], [0, 0, 1, 1], [], []>} : vector<16x32xf32>, vector<32x4xf32>, vector<16x4xf32> -> vector<16x4xf32>
    %c0_10 = arith.constant 0 : index
    %c0_11 = arith.constant 0 : index
    %11 = vector.load %arg5[%c0_10, %c0_11] : memref<1x4xf32, #tpu.memory_space<vmem>>, vector<1x4xf32>
    %12 = vector.broadcast %11 : vector<1x4xf32> to vector<16x4xf32>
    %13 = arith.addf %10, %12 : vector<16x4xf32>
    %c0_12 = arith.constant 0 : index
    %c0_13 = arith.constant 0 : index
    %14 = vector.load %arg6[%c0_12, %c0_13] : memref<32x4xf32, #tpu.memory_space<vmem>>, vector<32x4xf32>
    %cst_14 = arith.constant dense<0.000000e+00> : vector<16x4xf32>
    %15 = tpu.matmul %8, %14, %cst_14 {dimension_numbers = #tpu.dot_dimension_numbers<[1], [0], [0], [1], [0, 0, 1, 1], [], []>} : vector<16x32xf32>, vector<32x4xf32>, vector<16x4xf32> -> vector<16x4xf32>
    %c0_15 = arith.constant 0 : index
    %c0_16 = arith.constant 0 : index
    %16 = vector.load %arg7[%c0_15, %c0_16] : memref<1x4xf32, #tpu.memory_space<vmem>>, vector<1x4xf32>
    %17 = vector.broadcast %16 : vector<1x4xf32> to vector<16x4xf32>
    %18 = arith.addf %15, %17 : vector<16x4xf32>
    %19 = math.exp %13 : vector<16x4xf32>
    %20 = arith.mulf %1, %19 : vector<16x4xf32>
    %21 = arith.addf %20, %18 : vector<16x4xf32>
    %c0_17 = arith.constant 0 : index
    %c0_18 = arith.constant 0 : index
    %22 = vector.load %arg8[%c0_17, %c0_18] : memref<16x8xf32, #tpu.memory_space<vmem>>, vector<16x4xf32>
    tpu.vector_store %arg8[%c0_17, %c0_18], %0 {strides = array<i32>} : memref<16x8xf32, #tpu.memory_space<vmem>>, vector<16x4xf32>,
    %c0_19 = arith.constant 0 : index
    %c4_20 = arith.constant 4 : index
    %23 = vector.load %arg8[%c0_19, %c4_20] : memref<16x8xf32, #tpu.memory_space<vmem>>, vector<16x4xf32>
    tpu.vector_store %arg8[%c0_19, %c4_20], %21 {strides = array<i32>} : memref<16x8xf32, #tpu.memory_space<vmem>>, vector<16x4xf32>,
    return
  }
  func.func @transform_0(%arg0: i32) -> (i32, i32) {
    %c0_i32 = arith.constant 0 : i32
    %c0_i32_0 = arith.constant 0 : i32
    return %arg0, %c0_i32 : i32, i32
  }
  func.func @transform_1(%arg0: i32) -> (i32, i32) {
    %c0_i32 = arith.constant 0 : i32
    %c0_i32_0 = arith.constant 0 : i32
    %c0_i32_1 = arith.constant 0 : i32
    return %c0_i32, %c0_i32_0 : i32, i32
  }
  func.func @transform_2(%arg0: i32) -> (i32, i32) {
    %c0_i32 = arith.constant 0 : i32
    %c0_i32_0 = arith.constant 0 : i32
    %c0_i32_1 = arith.constant 0 : i32
    return %c0_i32, %c0_i32_0 : i32, i32
  }
  func.func @transform_3(%arg0: i32) -> (i32, i32) {
    %c0_i32 = arith.constant 0 : i32
    %c0_i32_0 = arith.constant 0 : i32
    %c0_i32_1 = arith.constant 0 : i32
    return %c0_i32, %c0_i32_0 : i32, i32
  }
  func.func @transform_4(%arg0: i32) -> (i32, i32) {
    %c0_i32 = arith.constant 0 : i32
    %c0_i32_0 = arith.constant 0 : i32
    %c0_i32_1 = arith.constant 0 : i32
    return %c0_i32, %c0_i32_0 : i32, i32
  }
  func.func @transform_5(%arg0: i32) -> (i32, i32) {
    %c0_i32 = arith.constant 0 : i32
    %c0_i32_0 = arith.constant 0 : i32
    %c0_i32_1 = arith.constant 0 : i32
    return %c0_i32, %c0_i32_0 : i32, i32
  }
  func.func @transform_6(%arg0: i32) -> (i32, i32) {
    %c0_i32 = arith.constant 0 : i32
    %c0_i32_0 = arith.constant 0 : i32
    %c0_i32_1 = arith.constant 0 : i32
    return %c0_i32, %c0_i32_0 : i32, i32
  }
  func.func @transform_7(%arg0: i32) -> (i32, i32) {
    %c0_i32 = arith.constant 0 : i32
    %c0_i32_0 = arith.constant 0 : i32
    return %arg0, %c0_i32 : i32, i32
  }
}

</mosaic_0001>

<bundles_post_ra>
// kernel: tpu_custom_call.1
= control target key start
LH: loop header
LB: loop body
LE: loop exit
PB: predicated region body
PF: predicated region fallthrough
CT: control target
= control target key end

     0   :  { %s785_s24 = smov 0   ;;  %s844_s0 = inlined_call_operand.vmem [shape: f32[64,8], index: 0, kind: input, shape index: {}]   ;;  %s845_s1 = inlined_call_operand.vmem [shape: f32[4,32], index: 1, kind: input, shape index: {}]   ;;  %s846_s2 = inlined_call_operand.vmem [shape: f32[1,32], index: 2, kind: input, shape index: {}]   ;;  %s847_s3 = inlined_call_operand.vmem [shape: f32[32,4], index: 3, kind: input, shape index: {}]   ;;  %s848_s4 = inlined_call_operand.vmem [shape: f32[1,4], index: 4, kind: input, shape index: {}]   ;;  %s849_s5 = inlined_call_operand.vmem [shape: f32[32,4], index: 5, kind: input, shape index: {}]   ;;  %s850_s6 = inlined_call_operand.vmem [shape: f32[1,4], index: 6, kind: input, shape index: {}]   ;;  %s851_s7 = inlined_call_operand.vmem [shape: f32[64,8], index: 7, kind: output, shape index: {}]  }
   0x1 LB: > { %s644_s25 = sadd.s32 4294967295, %s742_s24   ;;  %p648_p0 = scmp.ge.s32.totalorder %s742_s24, 1  ;;  %s742_s24 = sphi %s785_s24, %s17_s24  }
   0x2   : > { %p238_p1 = scmp.lt.s32.totalorder %s742_s24, 5 }
   0x4   : > { %p239_p2 = pnand %p648_p0, %p238_p1 }
   0x5   : > { %v284_v0 = vld [vmem:[%s845_s1] sm:$0xf] (!%p239_p2)  ;;  %vm299_vm0 = vcmask (!%p239_p2), 1043456   ;;  %s649_s28 = sshll.u32 (!%p239_p2), %s644_s25, 1  ;;  %v381_v2 = vld [vmem:[%s847_s3 + $0x8] sm:$0xff] (!%p239_p2)  ;;  %vm292_vm1 = vcmask (!%p239_p2), 31744  }
   0x6   : > { %242 = sbr.rel (%p239_p2) target bundleno = 588 (0x24c), region = 48  ;;  %v380_v1 = vld [vmem:[%s847_s3] sm:$0xff] (!%p239_p2)  ;;  %680 = vmatprep.subr.msk.mxu0 (!%p239_p2), %vm299_vm0, %v284_v0  ;;  %p271_p3 = scmp.lt.s32.totalorder (!%p239_p2), %s649_s28, 7  ;;  %v474_v4 = vld [vmem:[%s849_s5 + $0x8] sm:$0xff] (!%p239_p2)  ;;  %v382_v9 = vld [vmem:[%s847_s3 + $0x10] sm:$0xff] (!%p239_p2)  ;;  %vm391_vm2 = vcmask (!%p239_p2), 261120  }
   0x7   : > { %v473_v3 = vld [vmem:[%s849_s5] sm:$0xff] (!%p239_p2)  ;;  %681 = vmatpush3.msk.msra.mxu0 (!%p239_p2), %vm299_vm0, %v284_v0  ;;  %v707_v5 = vpack.c.bf16 (!%p239_p2), %v381_v2, %v380_v1  ;;  %v383_v10 = vld [vmem:[%s847_s3 + $0x18] sm:$0xff] (!%p239_p2)  ;;  %v475_v12 = vld [vmem:[%s849_s5 + $0x10] sm:$0xff] (!%p239_p2)  ;;  %s744_s13 = smov (!%p239_p2), 4   ;;  %vm585_vm3 = vcmask (!%p239_p2), 64544  }
   0x8   : > { %v715_v6 = vpack.c.bf16 (!%p239_p2), %v474_v4, %v473_v3  ;;  %v711_v11 = vpack.c.bf16 (!%p239_p2), %v383_v10, %v382_v9  ;;  %v476_v13 = vld [vmem:[%s849_s5 + $0x18] sm:$0xff] (!%p239_p2)  ;;  %v653_v15 = vld [vmem:[%s846_s2] ss:$0 sm:$0xff] (!%p239_p2) }
   0x9   : > { %708 = vmatprep.subr.bf16.mxu1 (!%p239_p2), %v707_v5  ;;  %v719_v14 = vpack.c.bf16 (!%p239_p2), %v476_v13, %v475_v12  ;;  %v657_v22 = vld [vmem:[%s848_s4] ss:$0 sm:$0xff] (!%p239_p2) }
   0xa   : > { %716 = vmatprep.subr.bf16.mxu0 (!%p239_p2), %v715_v6  ;;  %710 = vmatpush3.bf16.msra.mxu1 (!%p239_p2), %v707_v5  ;;  %v660_v23 = vld [vmem:[%s850_s6] ss:$0 sm:$0xff] (!%p239_p2) }
   0xb   : > { %712 = vmatprep.subr.bf16.mxu1 (!%p239_p2), %v711_v11 }
   0xd   : > { %s853_s28 = smov (!%p271_p3, %s649_s28), 7 }
   0xe   : > { %s650_s14 = sshll.u32 %s853_s28, 3  ;;  %714 = vmatpush3.bf16.msra.mxu1 %v711_v11 }
   0xf   : > { %s274_s17 = scalar_lea.vmem %s844_s0, %s650_s14  ;;  %s814_s20 = scalar_lea.vmem %s851_s7, %s650_s14 }
  0x10   : > { %v282_v7 = vld [vmem:[%s274_s17] sm:$0xff]  ;;  %v283_v8 = vld [vmem:[%s274_s17 + $0x8] sm:$0xff] }
  0x11   : > { %682 = vmatprep.mubr.msk.f32.mxu0 %vm292_vm1, %v282_v7  ;;  %583 = vst.msk [vmem:[%s814_s20] sm:$0xff] %vm292_vm1, %v282_v7  ;;  %584 = vst.msk [vmem:[%s814_s20 + $0x8] sm:$0xff] %vm292_vm1, %v283_v8 }
  0x12   : > { %683 = vmatmul.mubr.msk.f32.vlgmr.msra.gmra.mrb[0].mxu0 %vm292_vm1, %v283_v8 }
  0x13   : > { %718 = vmatpush3.bf16.msra.mxu0 %v715_v6 }
  0x14   : > { %720 = vmatprep.subr.bf16.mxu0 %v719_v14 }
  0x17   : > { %722 = vmatpush3.bf16.msra.mxu0 %v719_v14 }
  0xe5   : > { %v684_v16 = vpop.f32.mrb[0].mxu0 }
  0xe6   : > { %v375_v17 = vadd.f32 %v684_v16, %v653_v15  ;;  %v369_v18 = vpop.f32.mrb[1].mxu0 }
  0xe7   : > { %v370_v19 = vadd.f32 %v653_v15, %v369_v18 }
  0xe8   : > { %v379_v21 = vmax.f32 %v375_v17, 0.0 }
  0xe9   : > { %v378_v20 = vmax.f32 %v370_v19, 0.0 }
  0xeb   : > { %693 = vmatprep.mubr.msk.f32.mxu1 %vm391_vm2, %v378_v20  ;;  %704 = vmatprep.mubr.msk.f32.mxu0 %vm391_vm2, %v378_v20 }
  0xec   : > { %694 = vmatmul.mubr.msk.f32.vlgmr.msra.gmra.mrb[0].mxu1 %vm391_vm2, %v379_v21  ;;  %705 = vmatmul.mubr.msk.f32.vlgmr.msra.gmra.mrb[2].mxu0 %vm391_vm2, %v379_v21 }
 0x1bf   : > { %v695_v24 = vpop.f32.mrb[0].mxu1  ;;  %v706_v25 = vpop.f32.mrb[2].mxu0 }
 0x1c0   : > { %v464_v26 = vpop.f32.mrb[1].mxu1  ;;  %v550_v27 = vpop.f32.mrb[3].mxu0  ;;  %v470_v28 = vadd.f32 %v695_v24, %v657_v22  ;;  %v556_v33 = vadd.f32 %v706_v25, %v660_v23 }
 0x1c1   : > { %v465_v29 = vadd.f32 %v657_v22, %v464_v26  ;;  %v551_v30 = vadd.f32 %v660_v23, %v550_v27 }
 0x1c2   : > { %v561_v32 = vmul.f32 1.442695, %v470_v28 }
 0x1c3   : > { %v559_v31 = vmul.f32 1.442695, %v465_v29  ;;  %575 = vrot.lane.b32.xlu1 %v551_v30, %s744_s13 }
 0x1c5   : > { %732 = vpow2.f32 %v559_v31 }
 0x1c6   : > { %734 = vpow2.f32 %v561_v32 }
 0x1c7   : > { %577 = vrot.lane.b32.xlu1 %v556_v33, %s744_s13 }
 0x1cf   : > { %v733_v34 = vpop.eup %732 }
 0x1d0   : > { %565 = vrot.lane.b32.xlu0 %v733_v34, %s744_s13  ;;  %v735_v35 = vpop.eup %734 }
 0x1d4   : > { %567 = vrot.lane.b32.xlu0 %v735_v35, %s744_s13 }
 0x235   : > { %v576_v36 = vpop.permute.xlu1 %575 }
 0x239   : > { %v578_v42 = vpop.permute.xlu1 %577 }
 0x242   : > { %v566_v37 = vpop.permute.xlu0 %565 }
 0x243   : > { %v571_v38 = vmul.f32 %v566_v37, %v282_v7 }
 0x245   : > { %v581_v39 = vadd.f32 %v576_v36, %v571_v38 }
 0x246   : > { %v568_v40 = vpop.permute.xlu0 %567 }
 0x247   : > { %586 = vst.msk [vmem:[%s814_s20] sm:$0xff] %vm585_vm3, %v581_v39  ;;  %v572_v41 = vmul.f32 %v568_v40, %v283_v8 }
 0x249   : > { %v582_v43 = vadd.f32 %v578_v42, %v572_v41 }
 0x24b   : > { %587 = vst.msk [vmem:[%s814_s20 + $0x8] sm:$0xff] %vm585_vm3, %v582_v43 }
 0x24c PF: > { %s17_s24 = sadd.s32 1, %s742_s24  }
 0x24d   : > { %p14_p4 = scmp.ge.s32.totalorder %s17_s24, 6  }
 0x24f   :  { %16 = sbr.rel (!%p14_p4) target bundleno = 1 (0x1), region = 78 }

</bundles_post_ra>
